<compile_context>
chip_gen: v6e
topology: v6e:2x2x1
jax: 0.10.0
libtpu: 0.0.40
codegen_flags: <defaults>
</compile_context>

<pallas_src>
import functools

import jax
import jax.numpy as jnp
from jax import lax
from jax.experimental import pallas as pl
from jax.experimental.pallas import tpu as pltpu


def _round_up(x, m):
    return ((x + m - 1) // m) * m


def _vmem_capacity_bytes():
    """Per-generation VMEM size; conservative 64 MiB (v7x per-core) fallback."""
    try:
        info = pltpu.get_tpu_info()
        cap = int(getattr(info, "vmem_capacity_bytes", 0))
        if cap > 0:
            return cap
    except Exception:
        pass
    return 64 * 1024 * 1024


def _choose_block(l_pad, cout, cin_pad, halo, vmem_bytes):
    """Pick the lane-block width per generation (multiple of `halo`, >= halo)."""
    # vreg-pressure cap: acc + tap view + slab must stay well inside the
    # 64-entry vector register file (f32 vreg = 8x128).
    rows = pl.cdiv(cout, 8) + 2 * pl.cdiv(cin_pad, 8)
    cap_vreg = max(halo, (40 // max(rows, 1)) * 128)
    # VMEM cap: double-buffered input+output blocks should use <= ~1/4 of the
    # chip's VMEM (re-derived per generation; v7x has only 64 MiB per core).
    per_lane_bytes = 4 * 2 * (2 * cin_pad + cout)
    cap_vmem = max(halo, ((vmem_bytes // 4) // per_lane_bytes) // 128 * 128)
    # Split into >= 2 grid blocks when possible (v7x dual-TensorCore sharding).
    cap_split = max(halo, _round_up(pl.cdiv(l_pad, 2), 128))
    l_blk = max(halo, min(cap_vreg, cap_vmem, cap_split, _round_up(l_pad, halo)))
    return _round_up(l_blk, halo)          # halo spec's block index stays integral


def _conv_swish_tap_kernel(xa_ref, xb_ref, w_ref, o_ref, *,
                           tap_starts, cout, l_blk):
    """conv (accumulated per-tap matmuls) + bias + swish on one lane block.

    xa_ref: (cin_pad, l_blk)        this block's anchor columns.
    xb_ref: (cin_pad, halo)         right halo (head of the next block).
    w_ref:  (KH*KW, cout, cin_pad)  per-tap weights (bias folded into centre tap).
    o_ref:  (cout, l_blk)           swish(conv + bias), lane-dense.
    """
    # Slab = anchors + right halo, loaded once; the concatenate happens at a
    # 128-aligned lane boundary so it is just vreg placement.
    slab = jnp.concatenate([xa_ref[...], xb_ref[...]], axis=-1)

    acc = jnp.zeros((cout, l_blk), jnp.float32)
    for t, s in enumerate(tap_starts):      # static unroll over the KH*KW taps
        # Lane realignment of the in-register slab -> XLU rotate, overlaps MXU.
        view = slab[:, s:s + l_blk]
        acc = acc + jnp.dot(w_ref[t], view, preferred_element_type=jnp.float32)

    # swish epilogue; the exp inside sigmoid runs on the EUP slot.
    o_ref[...] = (acc * jax.nn.sigmoid(acc)).astype(o_ref.dtype)


def upsample_block_forward(x_nchw, w_oihw, bias, *, stride, padding, up_scale):
    """Forward pass of upsample_block: swish(PixelShuffle(conv2d(x)))."""
    N, cin, H, W = x_nchw.shape
    cout, _, KH, KW = w_oihw.shape
    r = up_scale
    assert cout % (r * r) == 0
    dt = x_nchw.dtype

    Hp, Wp = H + 2 * padding, W + 2 * padding
    Ho = (Hp - KH) // stride + 1
    Wo = (Wp - KW) // stride + 1
    # The crop below only keeps anchors whose tap windows are fully inside the
    # zero-padded grid, so the flat-index tap arithmetic never wraps across a
    # row / batch boundary for any output we keep.
    assert KH // 2 + stride * (Ho - 1) + (KH - 1 - KH // 2) <= Hp - 1
    assert KW // 2 + stride * (Wo - 1) + (KW - 1 - KW // 2) <= Wp - 1

    # ---- static layout parameters ----------------------------------------
    cin_pad = _round_up(cin + 1, 8)        # +1 = all-ones bias-carrier channel
    l_valid = N * Hp * Wp                  # flat padded spatial length
    l_pad = _round_up(l_valid, 128)        # lane-dense width before tiling
    deltas = [(kh - KH // 2) * Wp + (kw - KW // 2)
              for kh in range(KH) for kw in range(KW)]
    m_left = -min(deltas)                  # left margin folded into data placement
    margin_span = m_left + max(deltas)     # how far right a tap reaches past anchor
    halo = max(128, _round_up(margin_span, 128))
    tap_starts = tuple(m_left + d for d in deltas)

    vmem_bytes = _vmem_capacity_bytes()
    l_blk = _choose_block(l_pad, cout, cin_pad, halo, vmem_bytes)
    grid_n = pl.cdiv(l_pad, l_blk)
    l_total = grid_n * l_blk
    g = l_total + halo                     # flat input width incl. right halo

    # ---- one fused layout pass: channels-major flat zero-padded input ----
    xc = jnp.transpose(x_nchw, (1, 0, 2, 3))                    # (cin, N, H, W)
    xc = jnp.pad(xc, ((0, 0), (0, 0), (padding, padding), (padding, padding)))
    flat = xc.reshape(cin, l_valid)
    x_glob = jnp.zeros((cin_pad, g), dtype=dt)
    x_glob = x_glob.at[:cin, m_left:m_left + l_valid].set(flat)
    x_glob = x_glob.at[cin, :].set(1.0)                         # bias carrier row

    # ---- weights as (tap, cout, cin_pad); bias folded into the centre tap --
    w_k = jnp.transpose(w_oihw, (2, 3, 0, 1))                   # (KH, KW, cout, cin)
    w_k = jnp.pad(w_k, ((0, 0), (0, 0), (0, 0), (0, cin_pad - cin)))
    w_k = w_k.at[KH // 2, KW // 2, :, cin].set(bias.astype(w_k.dtype))
    w_taps = w_k.reshape(KH * KW, cout, cin_pad)

    kernel = functools.partial(_conv_swish_tap_kernel,
                               tap_starts=tap_starts, cout=cout, l_blk=l_blk)

    blk_ratio = l_blk // halo
    block_bytes = 4 * (2 * cin_pad * (l_blk + halo)   # double-buffered input blocks
                       + 2 * cout * l_blk             # double-buffered output block
                       + KH * KW * cout * cin_pad)    # resident weights
    vmem_limit = int(min(max(4 * block_bytes, 8 << 20), 3 * vmem_bytes // 4))

    cost = pl.CostEstimate(
        flops=2 * cout * cin_pad * KH * KW * l_total + 4 * cout * l_total,
        transcendentals=cout * l_total,
        bytes_accessed=4 * (cin_pad * g + KH * KW * cout * cin_pad
                            + cout * l_total))

    z = pl.pallas_call(
        kernel,
        out_shape=jax.ShapeDtypeStruct((cout, l_total), dt),
        grid=(grid_n,),
        in_specs=[
            # anchor columns of this block
            pl.BlockSpec((cin_pad, l_blk), lambda i: (0, i)),
            # right halo = head of the next block (same array, halo-width blocks)
            pl.BlockSpec((cin_pad, halo), lambda i: (0, (i + 1) * blk_ratio)),
            # per-tap weights, resident across the whole grid
            pl.BlockSpec((KH * KW, cout, cin_pad), lambda i: (0, 0, 0)),
        ],
        out_specs=pl.BlockSpec((cout, l_blk), lambda i: (0, i)),
        compiler_params=pltpu.CompilerParams(
            dimension_semantics=("parallel",),
            vmem_limit_bytes=vmem_limit),
        cost_estimate=cost,
    )(x_glob, x_glob, w_taps)

    # ---- one fused output pass: crop valid grid + PixelShuffle + NCHW -----
    # swish(PixelShuffle(y)) == PixelShuffle(swish(y)): shuffle is a permutation.
    # TODO(synk): emit the output already in shuffled (N, co, Ho*r, Wo*r) order
    # via a phase-indexed out_specs (grid over the r*r phases) to delete this
    # 6-D transpose, which dominates wall time at small problem sizes.
    y = z[:, :l_valid].reshape(cout, N, Hp, Wp)
    y = y[:, :,
          KH // 2: KH // 2 + stride * Ho: stride,
          KW // 2: KW // 2 + stride * Wo: stride]               # (cout, N, Ho, Wo)
    co = cout // (r * r)
    y = y.reshape(co, r, r, N, Ho, Wo)
    y = jnp.transpose(y, (3, 0, 4, 1, 5, 2))                    # (N, co, Ho, r, Wo, r)
    return y.reshape(N, co, Ho * r, Wo * r)


def _reference_forward(x_nchw, w_oihw, bias, *, stride, padding, up_scale):
    """Pure-JAX reference mimicking the PyTorch module (for verification)."""
    y = lax.conv_general_dilated(
        x_nchw, w_oihw,
        window_strides=(stride, stride),
        padding=((padding, padding), (padding, padding)),
        dimension_numbers=("NCHW", "OIHW", "NCHW"))
    y = y + bias.reshape(1, -1, 1, 1)
    n, c, h, w = y.shape
    r = up_scale
    co = c // (r * r)
    y = y.reshape(n, co, r, r, h, w)
    y = jnp.transpose(y, (0, 1, 4, 2, 5, 3)).reshape(n, co, h * r, w * r)
    return y * jax.nn.sigmoid(y)


if __name__ == "__main__":
    # Module config: in_channel=4, out_channel=16, kernels=3, strides=1,
    # up_scale_factor=2 (out_channel divisible by up_scale**2).
    N, Cin, H, W = 2, 4, 16, 16
    Cout, K, stride, r = 16, 3, 1, 2
    padding = K // 2

    key = jax.random.PRNGKey(0)
    kx, kw, kb = jax.random.split(key, 3)
    x = jax.random.normal(kx, (N, Cin, H, W), dtype=jnp.float32)
    # Deterministic synthetic params (PyTorch Conv2d weight shape: OIHW).
    fan_in = Cin * K * K
    bound = 1.0 / (fan_in ** 0.5)
    w = jax.random.uniform(kw, (Cout, Cin, K, K), jnp.float32, -bound, bound)
    b = jax.random.uniform(kb, (Cout,), jnp.float32, -bound, bound)

    fwd = jax.jit(functools.partial(upsample_block_forward,
                                    stride=stride, padding=padding, up_scale=r))
    out = jax.block_until_ready(fwd(x, w, b))

    ref = _reference_forward(x, w, b, stride=stride, padding=padding,
                             up_scale=r)
    assert out.shape == (N, Cout // (r * r), H * r, W * r), out.shape
    max_err = float(jnp.max(jnp.abs(out - ref)))
    assert jnp.allclose(out, ref, atol=5e-5, rtol=5e-5), max_err

    print("KERNEL_OK")
</pallas_src>

<mosaic_0001>
module attributes {stable_mosaic.version = 11 : i64} {
  func.func @_conv_swish_tap_kernel(%arg0: i32, %arg1: memref<8x384xf32, #tpu.memory_space<vmem>>, %arg2: memref<8x128xf32, #tpu.memory_space<vmem>>, %arg3: memref<9x16x8xf32, #tpu.memory_space<vmem>>, %arg4: memref<16x384xf32, #tpu.memory_space<vmem>>) attributes {dimension_semantics = [#tpu.dimension_semantics<parallel>], iteration_bounds = array<i64: 2>, scalar_prefetch = 0 : i64, scratch_operands = 0 : i64, tpu.core_type = #tpu.core_type<tc>, window_params = [{transform_indices = @transform_0, window_bounds = array<i64: 8, 384>}, {transform_indices = @transform_1, window_bounds = array<i64: 8, 128>}, {pipeline_mode = #tpu.pipeline_mode<synchronous>, transform_indices = @transform_2, window_bounds = array<i64: 9, 16, 8>}, {transform_indices = @transform_3, window_bounds = array<i64: 16, 384>}]} {
    %c0 = arith.constant 0 : index
    %c0_0 = arith.constant 0 : index
    %0 = vector.load %arg1[%c0, %c0_0] : memref<8x384xf32, #tpu.memory_space<vmem>>, vector<8x384xf32>
    %c0_1 = arith.constant 0 : index
    %c0_2 = arith.constant 0 : index
    %1 = vector.load %arg2[%c0_1, %c0_2] : memref<8x128xf32, #tpu.memory_space<vmem>>, vector<8x128xf32>
    %2 = tpu.concatenate %0, %1 in 1 : vector<8x384xf32>, vector<8x128xf32> -> vector<8x512xf32>
    %cst = arith.constant 0.000000e+00 : f32
    %3 = vector.broadcast %cst : f32 to vector<16x384xf32>
    %4 = vector.extract_strided_slice %2 {offsets = [0, 0], sizes = [8, 384], strides = [1, 1]} : vector<8x512xf32> to vector<8x384xf32>
    %c0_3 = arith.constant 0 : index
    %c0_4 = arith.constant 0 : index
    %c0_5 = arith.constant 0 : index
    %5 = vector.load %arg3[%c0_3, %c0_4, %c0_5] : memref<9x16x8xf32, #tpu.memory_space<vmem>>, vector<1x16x8xf32>
    %6 = vector.shape_cast %5 : vector<1x16x8xf32> to vector<16x8xf32>
    %cst_6 = arith.constant dense<0.000000e+00> : vector<16x384xf32>
    %7 = tpu.matmul %6, %4, %cst_6 {dimension_numbers = #tpu.dot_dimension_numbers<[1], [0], [0], [1], [0, 0, 1, 1], [], []>} : vector<16x8xf32>, vector<8x384xf32>, vector<16x384xf32> -> vector<16x384xf32>
    %8 = arith.addf %3, %7 : vector<16x384xf32>
    %9 = vector.extract_strided_slice %2 {offsets = [0, 1], sizes = [8, 384], strides = [1, 1]} : vector<8x512xf32> to vector<8x384xf32>
    %c1 = arith.constant 1 : index
    %c0_7 = arith.constant 0 : index
    %c0_8 = arith.constant 0 : index
    %10 = vector.load %arg3[%c1, %c0_7, %c0_8] : memref<9x16x8xf32, #tpu.memory_space<vmem>>, vector<1x16x8xf32>
    %11 = vector.shape_cast %10 : vector<1x16x8xf32> to vector<16x8xf32>
    %cst_9 = arith.constant dense<0.000000e+00> : vector<16x384xf32>
    %12 = tpu.matmul %11, %9, %cst_9 {dimension_numbers = #tpu.dot_dimension_numbers<[1], [0], [0], [1], [0, 0, 1, 1], [], []>} : vector<16x8xf32>, vector<8x384xf32>, vector<16x384xf32> -> vector<16x384xf32>
    %13 = arith.addf %8, %12 : vector<16x384xf32>
    %14 = vector.extract_strided_slice %2 {offsets = [0, 2], sizes = [8, 384], strides = [1, 1]} : vector<8x512xf32> to vector<8x384xf32>
    %c2 = arith.constant 2 : index
    %c0_10 = arith.constant 0 : index
    %c0_11 = arith.constant 0 : index
    %15 = vector.load %arg3[%c2, %c0_10, %c0_11] : memref<9x16x8xf32, #tpu.memory_space<vmem>>, vector<1x16x8xf32>
    %16 = vector.shape_cast %15 : vector<1x16x8xf32> to vector<16x8xf32>
    %cst_12 = arith.constant dense<0.000000e+00> : vector<16x384xf32>
    %17 = tpu.matmul %16, %14, %cst_12 {dimension_numbers = #tpu.dot_dimension_numbers<[1], [0], [0], [1], [0, 0, 1, 1], [], []>} : vector<16x8xf32>, vector<8x384xf32>, vector<16x384xf32> -> vector<16x384xf32>
    %18 = arith.addf %13, %17 : vector<16x384xf32>
    %19 = vector.extract_strided_slice %2 {offsets = [0, 18], sizes = [8, 384], strides = [1, 1]} : vector<8x512xf32> to vector<8x384xf32>
    %c3 = arith.constant 3 : index
    %c0_13 = arith.constant 0 : index
    %c0_14 = arith.constant 0 : index
    %20 = vector.load %arg3[%c3, %c0_13, %c0_14] : memref<9x16x8xf32, #tpu.memory_space<vmem>>, vector<1x16x8xf32>
    %21 = vector.shape_cast %20 : vector<1x16x8xf32> to vector<16x8xf32>
    %cst_15 = arith.constant dense<0.000000e+00> : vector<16x384xf32>
    %22 = tpu.matmul %21, %19, %cst_15 {dimension_numbers = #tpu.dot_dimension_numbers<[1], [0], [0], [1], [0, 0, 1, 1], [], []>} : vector<16x8xf32>, vector<8x384xf32>, vector<16x384xf32> -> vector<16x384xf32>
    %23 = arith.addf %18, %22 : vector<16x384xf32>
    %24 = vector.extract_strided_slice %2 {offsets = [0, 19], sizes = [8, 384], strides = [1, 1]} : vector<8x512xf32> to vector<8x384xf32>
    %c4 = arith.constant 4 : index
    %c0_16 = arith.constant 0 : index
    %c0_17 = arith.constant 0 : index
    %25 = vector.load %arg3[%c4, %c0_16, %c0_17] : memref<9x16x8xf32, #tpu.memory_space<vmem>>, vector<1x16x8xf32>
    %26 = vector.shape_cast %25 : vector<1x16x8xf32> to vector<16x8xf32>
    %cst_18 = arith.constant dense<0.000000e+00> : vector<16x384xf32>
    %27 = tpu.matmul %26, %24, %cst_18 {dimension_numbers = #tpu.dot_dimension_numbers<[1], [0], [0], [1], [0, 0, 1, 1], [], []>} : vector<16x8xf32>, vector<8x384xf32>, vector<16x384xf32> -> vector<16x384xf32>
    %28 = arith.addf %23, %27 : vector<16x384xf32>
    %29 = vector.extract_strided_slice %2 {offsets = [0, 20], sizes = [8, 384], strides = [1, 1]} : vector<8x512xf32> to vector<8x384xf32>
    %c5 = arith.constant 5 : index
    %c0_19 = arith.constant 0 : index
    %c0_20 = arith.constant 0 : index
    %30 = vector.load %arg3[%c5, %c0_19, %c0_20] : memref<9x16x8xf32, #tpu.memory_space<vmem>>, vector<1x16x8xf32>
    %31 = vector.shape_cast %30 : vector<1x16x8xf32> to vector<16x8xf32>
    %cst_21 = arith.constant dense<0.000000e+00> : vector<16x384xf32>
    %32 = tpu.matmul %31, %29, %cst_21 {dimension_numbers = #tpu.dot_dimension_numbers<[1], [0], [0], [1], [0, 0, 1, 1], [], []>} : vector<16x8xf32>, vector<8x384xf32>, vector<16x384xf32> -> vector<16x384xf32>
    %33 = arith.addf %28, %32 : vector<16x384xf32>
    %34 = vector.extract_strided_slice %2 {offsets = [0, 36], sizes = [8, 384], strides = [1, 1]} : vector<8x512xf32> to vector<8x384xf32>
    %c6 = arith.constant 6 : index
    %c0_22 = arith.constant 0 : index
    %c0_23 = arith.constant 0 : index
    %35 = vector.load %arg3[%c6, %c0_22, %c0_23] : memref<9x16x8xf32, #tpu.memory_space<vmem>>, vector<1x16x8xf32>
    %36 = vector.shape_cast %35 : vector<1x16x8xf32> to vector<16x8xf32>
    %cst_24 = arith.constant dense<0.000000e+00> : vector<16x384xf32>
    %37 = tpu.matmul %36, %34, %cst_24 {dimension_numbers = #tpu.dot_dimension_numbers<[1], [0], [0], [1], [0, 0, 1, 1], [], []>} : vector<16x8xf32>, vector<8x384xf32>, vector<16x384xf32> -> vector<16x384xf32>
    %38 = arith.addf %33, %37 : vector<16x384xf32>
    %39 = vector.extract_strided_slice %2 {offsets = [0, 37], sizes = [8, 384], strides = [1, 1]} : vector<8x512xf32> to vector<8x384xf32>
    %c7 = arith.constant 7 : index
    %c0_25 = arith.constant 0 : index
    %c0_26 = arith.constant 0 : index
    %40 = vector.load %arg3[%c7, %c0_25, %c0_26] : memref<9x16x8xf32, #tpu.memory_space<vmem>>, vector<1x16x8xf32>
    %41 = vector.shape_cast %40 : vector<1x16x8xf32> to vector<16x8xf32>
    %cst_27 = arith.constant dense<0.000000e+00> : vector<16x384xf32>
    %42 = tpu.matmul %41, %39, %cst_27 {dimension_numbers = #tpu.dot_dimension_numbers<[1], [0], [0], [1], [0, 0, 1, 1], [], []>} : vector<16x8xf32>, vector<8x384xf32>, vector<16x384xf32> -> vector<16x384xf32>
    %43 = arith.addf %38, %42 : vector<16x384xf32>
    %44 = vector.extract_strided_slice %2 {offsets = [0, 38], sizes = [8, 384], strides = [1, 1]} : vector<8x512xf32> to vector<8x384xf32>
    %c8 = arith.constant 8 : index
    %c0_28 = arith.constant 0 : index
    %c0_29 = arith.constant 0 : index
    %45 = vector.load %arg3[%c8, %c0_28, %c0_29] : memref<9x16x8xf32, #tpu.memory_space<vmem>>, vector<1x16x8xf32>
    %46 = vector.shape_cast %45 : vector<1x16x8xf32> to vector<16x8xf32>
    %cst_30 = arith.constant dense<0.000000e+00> : vector<16x384xf32>
    %47 = tpu.matmul %46, %44, %cst_30 {dimension_numbers = #tpu.dot_dimension_numbers<[1], [0], [0], [1], [0, 0, 1, 1], [], []>} : vector<16x8xf32>, vector<8x384xf32>, vector<16x384xf32> -> vector<16x384xf32>
    %48 = arith.addf %43, %47 : vector<16x384xf32>
    %49 = arith.negf %48 : vector<16x384xf32>
    %50 = math.exp %49 : vector<16x384xf32>
    %cst_31 = arith.constant 1.000000e+00 : f32
    %51 = vector.broadcast %cst_31 : f32 to vector<16x384xf32>
    %52 = arith.addf %51, %50 : vector<16x384xf32>
    %53 = arith.divf %51, %52 : vector<16x384xf32>
    %54 = arith.mulf %48, %53 : vector<16x384xf32>
    %c0_32 = arith.constant 0 : index
    %c0_33 = arith.constant 0 : index
    %55 = vector.load %arg4[%c0_32, %c0_33] : memref<16x384xf32, #tpu.memory_space<vmem>>, vector<16x384xf32>
    tpu.vector_store %arg4[%c0_32, %c0_33], %54 {strides = array<i32>} : memref<16x384xf32, #tpu.memory_space<vmem>>, vector<16x384xf32>,
    return
  }
  func.func @transform_0(%arg0: i32) -> (i32, i32) {
    %c0_i32 = arith.constant 0 : i32
    %c0_i32_0 = arith.constant 0 : i32
    return %c0_i32, %arg0 : i32, i32
  }
  func.func @transform_1(%arg0: i32) -> (i32, i32) {
    %c1_i32 = arith.constant 1 : i32
    %0 = arith.addi %arg0, %c1_i32 : i32
    %c3_i32 = arith.constant 3 : i32
    %1 = arith.muli %0, %c3_i32 : i32
    %c0_i32 = arith.constant 0 : i32
    %c0_i32_0 = arith.constant 0 : i32
    return %c0_i32, %1 : i32, i32
  }
  func.func @transform_2(%arg0: i32) -> (i32, i32, i32) {
    %c0_i32 = arith.constant 0 : i32
    %c0_i32_0 = arith.constant 0 : i32
    %c0_i32_1 = arith.constant 0 : i32
    %c0_i32_2 = arith.constant 0 : i32
    return %c0_i32, %c0_i32_0, %c0_i32_1 : i32, i32, i32
  }
  func.func @transform_3(%arg0: i32) -> (i32, i32) {
    %c0_i32 = arith.constant 0 : i32
    %c0_i32_0 = arith.constant 0 : i32
    return %c0_i32, %arg0 : i32, i32
  }
}

</mosaic_0001>

<bundles_post_ra>
// kernel: upsample_block_forward.1
= control target key start
LH: loop header
LB: loop body
LE: loop exit
PB: predicated region body
PF: predicated region fallthrough
CT: control target
= control target key end

     0   :  { %s2237_s12 = smov 0   ;;  %s2239_s13 = smov 0   ;;  %s2443_s0 = inlined_call_operand.vmem [shape: f32[8,896], index: 0, kind: input, shape index: {}, may-alias: {0,1}]   ;;  %s2444_s1 = inlined_call_operand.vmem [shape: f32[8,896], index: 1, kind: input, shape index: {}, may-alias: {0,1}]   ;;  %s2445_s2 = inlined_call_operand.vmem [shape: f32[9,16,8], index: 2, kind: input, shape index: {}]   ;;  %s2446_s3 = inlined_call_operand.vmem [shape: f32[16,768], index: 3, kind: output, shape index: {}]  }
   0x1   :  { %s2241_s14 = smov 0  }
   0x2 LB: > { %s2250_s15 = sadd.s32 4294967295, %s2206_s14   ;;  %s2252_s16 = sadd.s32 1, %s2206_s14   ;;  %s2206_s14 = sphi %s2241_s14, %s2450_s14   ;;  %s2202_s13 = sphi %s2239_s13, %s2449_s13   ;;  %s2198_s12 = sphi %s2237_s12, %s2448_s12  }
   0x3   : > { %s94_s17 = ssub.s32 %s2206_s14, %s2252_s16  ;;  %s97_s18 = sadd.s32 1, %s2202_s13 }
   0x4   : > { %p95_p0 = scmp.eq.s32.totalorder %s94_s17, 0  ;;  %p107_p1 = scmp.ne.s32.totalorder %s2202_s13, %s2198_s12 }
   0x5   : > { %p108_p2 = scmp.eq.s32.totalorder %s2250_s15, 1  ;;  %p1989_p3 = scmp.ge.s32.totalorder %s2206_s14, 1 }
   0x6   : > { %s2260_s19 = scalar_select %p95_p0, %s2202_s13, %s97_s18  }
   0x7   : > { %p2262_p4 = por %p108_p2, %p107_p1  ;;  %p163_p5 = scmp.lt.s32.totalorder %s2206_s14, 3 }
   0x9   : > { %p164_p6 = pnand %p1989_p3, %p163_p5 }
   0xa   : > { %s196_s21 = smul.u32 (!%p164_p6), 3, %s2250_s15  ;;  %s210_s22 = sadd.s32 (!%p164_p6), 1, %s2250_s15 }
   0xb   : > { %167 = sbr.rel (%p164_p6) target bundleno = 441 (0x1b9), region = 32  ;;  %s2209_s30 = smov (!%p164_p6), 127  }
   0xc   : > { %p201_p7 = scmp.lt.s32.totalorder (!%p164_p6), %s196_s21, 6  ;;  %s211_s23 = smul.u32 (!%p164_p6), 3, %s210_s22 }
   0xd   : > { %s2210_s8 = smov (!%p164_p6), 126   ;;  %s2211_s9 = smov (!%p164_p6), 110  }
   0xe   : > { %p212_p8 = scmp.lt.s32.totalorder (!%p164_p6), %s211_s23, 6  ;;  %s2212_s10 = smov (!%p164_p6), 109  }
   0xf   : > { %s2213_s11 = smov (!%p164_p6), 108   ;;  %s2214_s14 = smov (!%p164_p6), 92  }
  0x10   : > { %v2208_v0 = vmov 0.0   ;;  %v2272_v1 = vld [vmem:[%s2445_s2 + $0x10] sm:$0xff]  ;;  %vm247_vm0 = vcmask 64512   ;;  %s2452_s21 = smov (!%p201_p7, %s196_s21), 6  ;;  %s2454_s23 = smov (!%p212_p8, %s211_s23), 6  ;;  %vm240_vm1 = vcmask 1039360  }
  0x11   : > { %318 = vmatprep.mubr.f32.mxu0 %v2208_v0  ;;  %2083 = vmatprep.mubr.msk.f32.mxu1 %vm247_vm0, %v2272_v1  ;;  %s1990_s26 = sshll.u32 %s2452_s21, 3  ;;  %s1991_s4 = sshll.u32 %s2454_s23, 3  ;;  %vm575_vm2 = vcmask 1031168   ;;  %v1993_v16 = vld [vmem:[%s2445_s2 + $0x18] sm:$0xff]  ;;  %v223_v17 = vld [vmem:[%s2445_s2] sm:$0xff]  ;;  %v224_v21 = vld [vmem:[%s2445_s2 + $0x8] sm:$0xff] }
  0x12   : > { %s204_s29 = scalar_lea.vmem %s2443_s0, %s1990_s26  ;;  %s215_s7 = scalar_lea.vmem %s2444_s1, %s1991_s4  ;;  %vm757_vm3 = vcmask 900096   ;;  %v2002_v26 = vld [vmem:[%s2445_s2 + $0x20] sm:$0xff]  ;;  %v2003_v30 = vld [vmem:[%s2445_s2 + $0x28] sm:$0xff]  ;;  %vm939_vm4 = vcmask 891904   ;;  %v2008_v31 = vld [vmem:[%s2445_s2 + $0x30] sm:$0xff]  ;;  %vm1121_vm5 = vcmask 883712  }
  0x13   : > { %v2279_v2 = vld [vmem:[%s204_s29 + $0x8] sm:$0xff]  ;;  %v2281_v3 = vld [vmem:[%s204_s29] sm:$0xff]  ;;  %v221_v4 = vld [vmem:[%s204_s29 + $0x10] sm:$0xff]  ;;  %s2215_s17 = smov 91   ;;  %s2216_s18 = smov 90   ;;  %vm1303_vm6 = vcmask 752640  }
  0x14   : > { %234 = vrot.lane.b32.xlu0 %v2279_v2, %s2209_s30  ;;  %232 = vrot.lane.b32.xlu1 %v2281_v3, %s2209_s30  ;;  %v222_v5 = vld [vmem:[%s215_s7] sm:$0xff]  ;;  %v2009_v36 = vld [vmem:[%s2445_s2 + $0x38] sm:$0xff]  ;;  %vm1485_vm7 = vcmask 744448   ;;  %vm1667_vm8 = vcmask 736256   ;;  %s193_s7 = sand.u32 1, %s2198_s12   ;;  %s2053_s12 = smul.u32 (%p2262_p4), 24, %s2250_s15 }
  0x15   : > { %v2014_v41 = vld [vmem:[%s2445_s2 + $0x40] sm:$0xff]  ;;  %v2015_v45 = vld [vmem:[%s2445_s2 + $0x48] sm:$0xff]  ;;  %v2020_v46 = vld [vmem:[%s2445_s2 + $0x50] sm:$0xff] }
  0x16   : > { %v2021_v51 = vld [vmem:[%s2445_s2 + $0x58] sm:$0xff]  ;;  %v2026_v55 = vld [vmem:[%s2445_s2 + $0x60] sm:$0xff]  ;;  %v2027_v60 = vld [vmem:[%s2445_s2 + $0x68] sm:$0xff] }
  0x18   : > { %236 = vrot.lane.b32.xlu0 %v221_v4, %s2209_s30  ;;  %571 = vrot.lane.b32.xlu1 %v221_v4, %s2210_s8 }
  0x1c   : > { %569 = vrot.lane.b32.xlu0 %v2279_v2, %s2210_s8  ;;  %238 = vrot.lane.b32.xlu1 %v222_v5, %s2209_s30 }
  0x20   : > { %567 = vrot.lane.b32.xlu0 %v2281_v3, %s2210_s8  ;;  %573 = vrot.lane.b32.xlu1 %v222_v5, %s2210_s8  ;;  %s2126_s8 = smul.u32 48, %s193_s7 }
  0x24   : > { %751 = vrot.lane.b32.xlu0 %v2279_v2, %s2211_s9  ;;  %753 = vrot.lane.b32.xlu1 %v221_v4, %s2211_s9 }
  0x28   : > { %755 = vrot.lane.b32.xlu0 %v222_v5, %s2211_s9  ;;  %749 = vrot.lane.b32.xlu1 %v2281_v3, %s2211_s9  ;;  %s195_s9 = scalar_lea.vmem [#allocation2], %s2126_s8 }
  0x2c   : > { %933 = vrot.lane.b32.xlu0 %v2279_v2, %s2212_s10  ;;  %935 = vrot.lane.b32.xlu1 %v221_v4, %s2212_s10 }
  0x30   : > { %931 = vrot.lane.b32.xlu0 %v2281_v3, %s2212_s10  ;;  %937 = vrot.lane.b32.xlu1 %v222_v5, %s2212_s10 }
  0x34   : > { %1115 = vrot.lane.b32.xlu0 %v2279_v2, %s2213_s11  ;;  %1117 = vrot.lane.b32.xlu1 %v221_v4, %s2213_s11 }
  0x38   : > { %1119 = vrot.lane.b32.xlu0 %v222_v5, %s2213_s11  ;;  %1113 = vrot.lane.b32.xlu1 %v2281_v3, %s2213_s11 }
  0x3c   : > { %1297 = vrot.lane.b32.xlu0 %v2279_v2, %s2214_s14  ;;  %1299 = vrot.lane.b32.xlu1 %v221_v4, %s2214_s14 }
  0x40   : > { %1295 = vrot.lane.b32.xlu0 %v2281_v3, %s2214_s14  ;;  %1301 = vrot.lane.b32.xlu1 %v222_v5, %s2214_s14  ;;  %s1895_s14 = scalar_lea.vmem (%p2262_p4), %s2446_s3, %s2053_s12 }
  0x44   : > { %1479 = vrot.lane.b32.xlu0 %v2279_v2, %s2215_s17  ;;  %1481 = vrot.lane.b32.xlu1 %v221_v4, %s2215_s17 }
  0x48   : > { %1483 = vrot.lane.b32.xlu0 %v222_v5, %s2215_s17  ;;  %1477 = vrot.lane.b32.xlu1 %v2281_v3, %s2215_s17 }
  0x4c   : > { %1661 = vrot.lane.b32.xlu0 %v2279_v2, %s2216_s18  ;;  %1663 = vrot.lane.b32.xlu1 %v221_v4, %s2216_s18 }
  0x50   : > { %1659 = vrot.lane.b32.xlu0 %v2281_v3, %s2216_s18  ;;  %1665 = vrot.lane.b32.xlu1 %v222_v5, %s2216_s18 }
  0x86   : > { %v235_v6 = vpop.permute.xlu0 %234  ;;  %v233_v7 = vpop.permute.xlu1 %232 }
  0x87   : > { %v241_v11 = vsel %vm240_vm1, %v233_v7, %v235_v6 }
  0x8a   : > { %v237_v8 = vpop.permute.xlu0 %236  ;;  %v572_v9 = vpop.permute.xlu1 %571 }
  0x8b   : > { %v242_v10 = vsel %vm240_vm1, %v235_v6, %v237_v8  ;;  %v2033_v6 = vld [vmem:[%s2445_s2 + $0x78] sm:$0xff] }
  0x8c   : > { %284 = vmatprep.subr.mxu0 %v242_v10  ;;  %v2038_v10 = vld [vmem:[%s2445_s2 + $0x80] sm:$0xff] }
  0x8d   : > { %285 = vmatpush1.msra.mxu0 %v241_v11 }
  0x8e   : > { %v570_v12 = vpop.permute.xlu0 %569  ;;  %1994 = vmatmul.mubr.msk.f32.vlgmr.msra.gmra.mxu0 %vm247_vm0, %v2272_v1  ;;  %2086 = vmatprep.subr.mxu0 %v221_v4  ;;  %v239_v13 = vpop.permute.xlu1 %238  ;;  %v2032_v1 = vld [vmem:[%s2445_s2 + $0x70] sm:$0xff] }
  0x8f   : > { %2087 = vmatpush3.msra.mxu0 %v221_v4  ;;  %v243_v14 = vsel %vm240_vm1, %v237_v8, %v239_v13  ;;  %v577_v15 = vsel %vm575_vm2, %v570_v12, %v572_v9  ;;  %324 = vmatprep.mubr.f32.mxu0 %v2208_v0 }
  0x90   : > { %2081 = vmatprep.subr.mxu1 %v243_v14  ;;  %618 = vmatprep.subr.mxu0 %v577_v15  ;;  %v2039_v15 = vld [vmem:[%s2445_s2 + $0x88] sm:$0xff] }
  0x91   : > { %2082 = vmatpush3.msra.mxu1 %v243_v14 }
  0x92   : > { %v568_v18 = vpop.permute.xlu0 %567  ;;  %1995 = vmatmul.mubr.msk.f32.gmra.mxu0 %vm247_vm0, %v1993_v16  ;;  %2084 = vmatmul.mubr.msk.f32.vlgmr.msra.gmra.mxu1 %vm247_vm0, %v1993_v16  ;;  %v574_v19 = vpop.permute.xlu1 %573 }
  0x93   : > { %442 = vmatprep.subr.mxu1 %v2279_v2  ;;  %v578_v20 = vsel %vm575_vm2, %v572_v9, %v574_v19  ;;  %476 = vmatprep.mubr.f32.mxu1 %v2208_v0  ;;  %v576_v22 = vsel %vm575_vm2, %v568_v18, %v570_v12 }
  0x94   : > { %443 = vmatpush1.msra.mxu1 %v2281_v3  ;;  %2088 = vmatprep.mubr.msk.f32.mxu0 %vm247_vm0, %v223_v17 }
  0x95   : > { %2091 = vmatprep.subr.mxu1 %v578_v20 }
  0x96   : > { %v752_v23 = vpop.permute.xlu0 %751  ;;  %1998 = vmatmul.mubr.msk.f32.vlgmr.msra.gmra.mxu1 %vm247_vm0, %v223_v17  ;;  %2089 = vmatmul.mubr.msk.f32.vlgmr.msra.gmra.mxu0 %vm247_vm0, %v224_v21  ;;  %v754_v24 = vpop.permute.xlu1 %753 }
  0x97   : > { %619 = vmatpush1.msra.mxu0 %v576_v22  ;;  %2092 = vmatpush3.msra.mxu1 %v578_v20  ;;  %v759_v25 = vsel %vm757_vm3, %v752_v23, %v754_v24 }
  0x98   : > { %800 = vmatprep.subr.mxu1 %v759_v25  ;;  %482 = vmatprep.mubr.f32.mxu1 %v2208_v0 }
  0x99   : > { %652 = vmatprep.mubr.f32.mxu0 %v2208_v0 }
  0x9a   : > { %v756_v27 = vpop.permute.xlu0 %755  ;;  %1999 = vmatmul.mubr.msk.f32.gmra.mxu1 %vm247_vm0, %v224_v21  ;;  %2004 = vmatmul.mubr.msk.f32.vlgmr.msra.gmra.mxu0 %vm247_vm0, %v2002_v26  ;;  %v750_v28 = vpop.permute.xlu1 %749 }
  0x9b   : > { %v760_v29 = vsel %vm757_vm3, %v754_v24, %v756_v27  ;;  %658 = vmatprep.mubr.f32.mxu0 %v2208_v0  ;;  %2093 = vmatprep.mubr.msk.f32.mxu1 %vm247_vm0, %v2002_v26  ;;  %v758_v32 = vsel %vm757_vm3, %v750_v28, %v752_v23 }
  0x9c   : > { %2096 = vmatprep.subr.mxu0 %v760_v29 }
  0x9d   : > { %2097 = vmatpush3.msra.mxu0 %v760_v29 }
  0x9e   : > { %v934_v33 = vpop.permute.xlu0 %933  ;;  %2005 = vmatmul.mubr.msk.f32.gmra.mxu0 %vm247_vm0, %v2003_v30  ;;  %2094 = vmatmul.mubr.msk.f32.vlgmr.msra.gmra.mxu1 %vm247_vm0, %v2003_v30  ;;  %v936_v34 = vpop.permute.xlu1 %935 }
  0x9f   : > { %801 = vmatpush1.msra.mxu1 %v758_v32  ;;  %v941_v35 = vsel %vm939_vm4, %v934_v33, %v936_v34  ;;  %834 = vmatprep.mubr.f32.mxu1 %v2208_v0 }
  0xa0   : > { %982 = vmatprep.subr.mxu0 %v941_v35  ;;  %2098 = vmatprep.mubr.msk.f32.mxu0 %vm247_vm0, %v2008_v31 }
  0xa2   : > { %v932_v37 = vpop.permute.xlu0 %931  ;;  %2010 = vmatmul.mubr.msk.f32.vlgmr.msra.gmra.mxu1 %vm247_vm0, %v2008_v31  ;;  %2099 = vmatmul.mubr.msk.f32.vlgmr.msra.gmra.mxu0 %vm247_vm0, %v2009_v36  ;;  %v938_v38 = vpop.permute.xlu1 %937 }
  0xa3   : > { %v940_v39 = vsel %vm939_vm4, %v932_v37, %v934_v33  ;;  %v942_v40 = vsel %vm939_vm4, %v936_v34, %v938_v38  ;;  %840 = vmatprep.mubr.f32.mxu1 %v2208_v0  ;;  %1016 = vmatprep.mubr.f32.mxu0 %v2208_v0 }
  0xa4   : > { %983 = vmatpush1.msra.mxu0 %v940_v39  ;;  %2101 = vmatprep.subr.mxu1 %v942_v40 }
  0xa5   : > { %2102 = vmatpush3.msra.mxu1 %v942_v40 }
  0xa6   : > { %v1116_v42 = vpop.permute.xlu0 %1115  ;;  %2011 = vmatmul.mubr.msk.f32.gmra.mxu1 %vm247_vm0, %v2009_v36  ;;  %2016 = vmatmul.mubr.msk.f32.vlgmr.msra.gmra.mxu0 %vm247_vm0, %v2014_v41  ;;  %v1118_v43 = vpop.permute.xlu1 %1117 }
  0xa7   : > { %v1123_v44 = vsel %vm1121_vm5, %v1116_v42, %v1118_v43  ;;  %1022 = vmatprep.mubr.f32.mxu0 %v2208_v0  ;;  %2103 = vmatprep.mubr.msk.f32.mxu1 %vm247_vm0, %v2014_v41 }
  0xa8   : > { %1164 = vmatprep.subr.mxu1 %v1123_v44 }
  0xaa   : > { %v1120_v47 = vpop.permute.xlu0 %1119  ;;  %2017 = vmatmul.mubr.msk.f32.gmra.mxu0 %vm247_vm0, %v2015_v45  ;;  %2104 = vmatmul.mubr.msk.f32.vlgmr.msra.gmra.mxu1 %vm247_vm0, %v2015_v45  ;;  %v1114_v48 = vpop.permute.xlu1 %1113 }
  0xab   : > { %v1122_v49 = vsel %vm1121_vm5, %v1114_v48, %v1116_v42  ;;  %v1124_v50 = vsel %vm1121_vm5, %v1118_v43, %v1120_v47  ;;  %1198 = vmatprep.mubr.f32.mxu1 %v2208_v0  ;;  %2108 = vmatprep.mubr.msk.f32.mxu0 %vm247_vm0, %v2020_v46 }
  0xac   : > { %1165 = vmatpush1.msra.mxu1 %v1122_v49  ;;  %2106 = vmatprep.subr.mxu0 %v1124_v50 }
  0xad   : > { %2107 = vmatpush3.msra.mxu0 %v1124_v50 }
  0xae   : > { %v1298_v52 = vpop.permute.xlu0 %1297  ;;  %2022 = vmatmul.mubr.msk.f32.vlgmr.msra.gmra.mxu1 %vm247_vm0, %v2020_v46  ;;  %2109 = vmatmul.mubr.msk.f32.vlgmr.msra.gmra.mxu0 %vm247_vm0, %v2021_v51  ;;  %v1300_v53 = vpop.permute.xlu1 %1299 }
  0xaf   : > { %v1305_v54 = vsel %vm1303_vm6, %v1298_v52, %v1300_v53  ;;  %1204 = vmatprep.mubr.f32.mxu1 %v2208_v0  ;;  %1380 = vmatprep.mubr.f32.mxu0 %v2208_v0 }
  0xb0   : > { %1346 = vmatprep.subr.mxu0 %v1305_v54 }
  0xb2   : > { %v1296_v56 = vpop.permute.xlu0 %1295  ;;  %2023 = vmatmul.mubr.msk.f32.gmra.mxu1 %vm247_vm0, %v2021_v51  ;;  %v1302_v57 = vpop.permute.xlu1 %1301 }
  0xb3   : > { %v1304_v58 = vsel %vm1303_vm6, %v1296_v56, %v1298_v52  ;;  %v1306_v59 = vsel %vm1303_vm6, %v1300_v53, %v1302_v57  ;;  %2113 = vmatprep.mubr.msk.f32.mxu1 %vm247_vm0, %v2026_v55 }
  0xb4   : > { %1347 = vmatpush1.msra.mxu0 %v1304_v58  ;;  %2111 = vmatprep.subr.mxu1 %v1306_v59 }
  0xb5   : > { %2028 = vmatmul.mubr.msk.f32.vlgmr.msra.gmra.mxu0 %vm247_vm0, %v2026_v55  ;;  %2112 = vmatpush3.msra.mxu1 %v1306_v59 }
  0xb6   : > { %v1480_v61 = vpop.permute.xlu0 %1479  ;;  %2114 = vmatmul.mubr.msk.f32.vlgmr.msra.gmra.mxu1 %vm247_vm0, %v2027_v60  ;;  %v1482_v62 = vpop.permute.xlu1 %1481  ;;  %1386 = vmatprep.mubr.f32.mxu0 %v2208_v0 }
  0xb7   : > { %v1487_v63 = vsel %vm1485_vm7, %v1480_v61, %v1482_v62  ;;  %1562 = vmatprep.mubr.f32.mxu1 %v2208_v0 }
  0xb8   : > { %1528 = vmatprep.subr.mxu1 %v1487_v63 }
  0xb9   : > { %2029 = vmatmul.mubr.msk.f32.gmra.mxu0 %vm247_vm0, %v2027_v60 }
  0xba   : > { %v1484_v2 = vpop.permute.xlu0 %1483  ;;  %v1478_v3 = vpop.permute.xlu1 %1477  ;;  %2118 = vmatprep.mubr.msk.f32.mxu0 %vm247_vm0, %v2032_v1 }
  0xbb   : > { %v1486_v4 = vsel %vm1485_vm7, %v1478_v3, %v1480_v61  ;;  %v1488_v5 = vsel %vm1485_vm7, %v1482_v62, %v1484_v2 }
  0xbc   : > { %1529 = vmatpush1.msra.mxu1 %v1486_v4  ;;  %2116 = vmatprep.subr.mxu0 %v1488_v5 }
  0xbd   : > { %2034 = vmatmul.mubr.msk.f32.vlgmr.msra.gmra.mxu1 %vm247_vm0, %v2032_v1  ;;  %2117 = vmatpush3.msra.mxu0 %v1488_v5 }
  0xbe   : > { %v1662_v7 = vpop.permute.xlu0 %1661  ;;  %2119 = vmatmul.mubr.msk.f32.vlgmr.msra.gmra.mxu0 %vm247_vm0, %v2033_v6  ;;  %v1664_v8 = vpop.permute.xlu1 %1663  ;;  %1568 = vmatprep.mubr.f32.mxu1 %v2208_v0 }
  0xbf   : > { %v1669_v9 = vsel %vm1667_vm8, %v1662_v7, %v1664_v8  ;;  %1744 = vmatprep.mubr.f32.mxu0 %v2208_v0 }
  0xc0   : > { %1710 = vmatprep.subr.mxu0 %v1669_v9 }
  0xc1   : > { %2035 = vmatmul.mubr.msk.f32.gmra.mxu1 %vm247_vm0, %v2033_v6 }
  0xc2   : > { %v1660_v11 = vpop.permute.xlu0 %1659  ;;  %v1666_v12 = vpop.permute.xlu1 %1665  ;;  %2123 = vmatprep.mubr.msk.f32.mxu1 %vm247_vm0, %v2038_v10 }
  0xc3   : > { %v1668_v13 = vsel %vm1667_vm8, %v1660_v11, %v1662_v7  ;;  %v1670_v14 = vsel %vm1667_vm8, %v1664_v8, %v1666_v12 }
  0xc4   : > { %1711 = vmatpush1.msra.mxu0 %v1668_v13  ;;  %2121 = vmatprep.subr.mxu1 %v1670_v14 }
  0xc5   : > { %2040 = vmatmul.mubr.msk.f32.vlgmr.msra.gmra.mxu0 %vm247_vm0, %v2038_v10  ;;  %2122 = vmatpush3.msra.mxu1 %v1670_v14 }
  0xc6   : > { %2124 = vmatmul.mubr.msk.f32.vlgmr.msra.gmra.mxu1 %vm247_vm0, %v2039_v15  ;;  %1750 = vmatprep.mubr.f32.mxu0 %v2208_v0 }
  0xc9   : > { %2041 = vmatmul.mubr.msk.f32.gmra.mxu0 %vm247_vm0, %v2039_v15 }
 0x14e   : > { %v320_v16 = vpop.f32.mrf.mxu0 }
 0x150   : > { %v322_v17 = vpop.f32.mrf.mxu0 }
 0x152   : > { %v326_v18 = vpop.f32.mrf.mxu0  ;;  %v2085_v19 = vpop.f32.mrf.mxu1 }
 0x154   : > { %v328_v20 = vpop.f32.mrf.mxu0  ;;  %v397_v21 = vpop.f32.mrf.mxu1 }
 0x156   : > { %v478_v22 = vpop.f32.mrf.mxu1  ;;  %v2090_v23 = vpop.f32.mrf.mxu0 }
 0x157   : > { %v479_v54 = vadd.f32 %v478_v22, %v320_v16  ;;  %v561_v55 = vadd.f32 %v2090_v23, %v2085_v19 }
 0x158   : > { %v480_v24 = vpop.f32.mrf.mxu1  ;;  %v555_v25 = vpop.f32.mrf.mxu0 }
 0x159   : > { %v481_v57 = vadd.f32 %v480_v24, %v322_v17  ;;  %v556_v59 = vadd.f32 %v555_v25, %v397_v21 }
 0x15a   : > { %v484_v26 = vpop.f32.mrf.mxu1  ;;  %v654_v27 = vpop.f32.mrf.mxu0 }
 0x15b   : > { %v740_v58 = vadd.f32 %v654_v27, %v479_v54  ;;  %v485_v63 = vadd.f32 %v484_v26, %v326_v18 }
 0x15c   : > { %v486_v28 = vpop.f32.mrf.mxu1  ;;  %v656_v29 = vpop.f32.mrf.mxu0 }
 0x15d   : > { %v741_v1 = vadd.f32 %v656_v29, %v481_v57  ;;  %v487_v6 = vadd.f32 %v486_v28, %v328_v20 }
 0x15e   : > { %v660_v30 = vpop.f32.mrf.mxu0  ;;  %v2095_v31 = vpop.f32.mrf.mxu1 }
 0x15f   : > { %v745_v60 = vadd.f32 %v2095_v31, %v561_v55  ;;  %v743_v7 = vadd.f32 %v660_v30, %v485_v63 }
 0x160   : > { %v662_v32 = vpop.f32.mrf.mxu0  ;;  %v731_v0 = vpop.f32.mrf.mxu1 }
 0x161   : > { %v742_v3 = vadd.f32 %v731_v0, %v556_v59  ;;  %v744_v14 = vadd.f32 %v662_v32, %v487_v6 }
 0x162   : > { %v836_v33 = vpop.f32.mrf.mxu1  ;;  %v2100_v34 = vpop.f32.mrf.mxu0 }
 0x163   : > { %v922_v2 = vadd.f32 %v836_v33, %v740_v58  ;;  %v927_v4 = vadd.f32 %v2100_v34, %v745_v60 }
 0x164   : > { %v838_v35 = vpop.f32.mrf.mxu1  ;;  %v913_v36 = vpop.f32.mrf.mxu0 }
 0x165   : > { %v923_v8 = vadd.f32 %v838_v35, %v741_v1  ;;  %v924_v10 = vadd.f32 %v913_v36, %v742_v3 }
 0x166   : > { %v842_v37 = vpop.f32.mrf.mxu1  ;;  %v1018_v38 = vpop.f32.mrf.mxu0 }
 0x167   : > { %v1104_v9 = vadd.f32 %v1018_v38, %v922_v2  ;;  %v925_v15 = vadd.f32 %v842_v37, %v743_v7 }
 0x168   : > { %v844_v39 = vpop.f32.mrf.mxu1  ;;  %v1020_v40 = vpop.f32.mrf.mxu0 }
 0x169   : > { %v1105_v16 = vadd.f32 %v1020_v40, %v923_v8  ;;  %v926_v22 = vadd.f32 %v844_v39, %v744_v14 }
 0x16a   : > { %v1024_v41 = vpop.f32.mrf.mxu0  ;;  %v2105_v42 = vpop.f32.mrf.mxu1 }
 0x16b   : > { %v1109_v11 = vadd.f32 %v2105_v42, %v927_v4  ;;  %v1107_v23 = vadd.f32 %v1024_v41, %v925_v15 }
 0x16c   : > { %v1026_v43 = vpop.f32.mrf.mxu0  ;;  %v1095_v44 = vpop.f32.mrf.mxu1 }
 0x16d   : > { %v1106_v19 = vadd.f32 %v1095_v44, %v924_v10  ;;  %v1108_v29 = vadd.f32 %v1026_v43, %v926_v22 }
 0x16e   : > { %v1200_v45 = vpop.f32.mrf.mxu1  ;;  %v2110_v46 = vpop.f32.mrf.mxu0 }
 0x16f   : > { %v1286_v17 = vadd.f32 %v1200_v45, %v1104_v9  ;;  %v1291_v21 = vadd.f32 %v2110_v46, %v1109_v11 }
 0x170   : > { %v1202_v47 = vpop.f32.mrf.mxu1  ;;  %v1277_v49 = vpop.f32.mrf.mxu0 }
 0x171   : > { %v1287_v24 = vadd.f32 %v1202_v47, %v1105_v16  ;;  %v1288_v26 = vadd.f32 %v1277_v49, %v1106_v19 }
 0x172   : > { %v1206_v48 = vpop.f32.mrf.mxu1 }
 0x173   : > { %v1289_v30 = vadd.f32 %v1206_v48, %v1107_v23 }
 0x174   : > { %v1208_v50 = vpop.f32.mrf.mxu1 }
 0x175   : > { %v1382_v51 = vpop.f32.mrf.mxu0  ;;  %v1290_v35 = vadd.f32 %v1208_v50, %v1108_v29 }
 0x176   : > { %v2115_v52 = vpop.f32.mrf.mxu1  ;;  %v1468_v25 = vadd.f32 %v1382_v51, %v1286_v17 }
 0x177   : > { %v1384_v53 = vpop.f32.mrf.mxu0  ;;  %v1473_v20 = vadd.f32 %v2115_v52, %v1291_v21 }
 0x178   : > { %v1459_v61 = vpop.f32.mrf.mxu1  ;;  %v1469_v31 = vadd.f32 %v1384_v53, %v1287_v24 }
 0x179   : > { %v1388_v56 = vpop.f32.mrf.mxu0  ;;  %v1470_v33 = vadd.f32 %v1459_v61, %v1288_v26 }
 0x17a   : > { %v1471_v36 = vadd.f32 %v1388_v56, %v1289_v30 }
 0x17b   : > { %v1390_v62 = vpop.f32.mrf.mxu0 }
 0x17c   : > { %v1472_v44 = vadd.f32 %v1390_v62, %v1290_v35 }
 0x17d   : > { %v1564_v5 = vpop.f32.mrf.mxu1 }
 0x17e   : > { %v2120_v12 = vpop.f32.mrf.mxu0  ;;  %v1650_v0 = vadd.f32 %v1564_v5, %v1468_v25 }
 0x17f   : > { %v1566_v13 = vpop.f32.mrf.mxu1  ;;  %v1655_v32 = vadd.f32 %v2120_v12, %v1473_v20 }
 0x180   : > { %v1641_v27 = vpop.f32.mrf.mxu0  ;;  %v1651_v37 = vadd.f32 %v1566_v13, %v1469_v31 }
 0x181   : > { %v1570_v18 = vpop.f32.mrf.mxu1  ;;  %v1652_v39 = vadd.f32 %v1641_v27, %v1470_v33 }
 0x182   : > { %v1653_v45 = vadd.f32 %v1570_v18, %v1471_v36 }
 0x183   : > { %v1572_v28 = vpop.f32.mrf.mxu1 }
 0x184   : > { %v1654_v52 = vadd.f32 %v1572_v28, %v1472_v44 }
 0x185   : > { %v1746_v34 = vpop.f32.mrf.mxu0 }
 0x186   : > { %v1832_v38 = vadd.f32 %v1746_v34, %v1650_v0  ;;  %v2125_v40 = vpop.f32.mrf.mxu1 }
 0x187   : > { %v1837_v41 = vadd.f32 %v2125_v40, %v1655_v32  ;;  %v1748_v42 = vpop.f32.mrf.mxu0 }
 0x188   : > { %v2044_v46 = vmul.f32 -1.442695, %v1832_v38  ;;  %v1833_v47 = vadd.f32 %v1748_v42, %v1651_v37  ;;  %v1823_v49 = vpop.f32.mrf.mxu1 }
 0x189   : > { %v2049_v43 = vmul.f32 -1.442695, %v1837_v41  ;;  %v1834_v48 = vadd.f32 %v1823_v49, %v1652_v39  ;;  %v1752_v51 = vpop.f32.mrf.mxu0 }
 0x18a   : > { %2160 = vpow2.f32 %v2044_v46  ;;  %v2045_v53 = vmul.f32 -1.442695, %v1833_v47  ;;  %v1835_v54 = vadd.f32 %v1752_v51, %v1653_v45 }
 0x18b   : > { %2162 = vpow2.f32 %v2049_v43  ;;  %v2046_v50 = vmul.f32 -1.442695, %v1834_v48  ;;  %v1754_v55 = vpop.f32.mrf.mxu0 }
 0x18c   : > { %2164 = vpow2.f32 %v2045_v53  ;;  %v2047_v56 = vmul.f32 -1.442695, %v1835_v54  ;;  %v1836_v57 = vadd.f32 %v1754_v55, %v1654_v52 }
 0x18d   : > { %2166 = vpow2.f32 %v2046_v50 }
 0x18e   : > { %2168 = vpow2.f32 %v2047_v56  ;;  %v2048_v58 = vmul.f32 -1.442695, %v1836_v57 }
 0x190   : > { %2170 = vpow2.f32 %v2048_v58 }
 0x197   : > { %v2161_v59 = vpop.eup %2160 }
 0x198   : > { %v2163_v60 = vpop.eup %2162  ;;  %v1856_v61 = vadd.f32 1.0, %v2161_v59 }
 0x199   : > { %v2165_v62 = vpop.eup %2164  ;;  %v1861_v63 = vadd.f32 1.0, %v2163_v60 }
 0x19a   : > { %v2167_v1 = vpop.eup %2166  ;;  %2172 = vrcp.f32 %v1856_v61  ;;  %v1857_v2 = vadd.f32 1.0, %v2165_v62 }
 0x19b   : > { %v2169_v3 = vpop.eup %2168  ;;  %2174 = vrcp.f32 %v1861_v63  ;;  %v1858_v4 = vadd.f32 1.0, %v2167_v1 }
 0x19c   : > { %2176 = vrcp.f32 %v1857_v2  ;;  %v1859_v5 = vadd.f32 1.0, %v2169_v3 }
 0x19d   : > { %v2171_v6 = vpop.eup %2170  ;;  %2178 = vrcp.f32 %v1858_v4 }
 0x19e   : > { %2180 = vrcp.f32 %v1859_v5  ;;  %v1860_v7 = vadd.f32 1.0, %v2171_v6 }
 0x1a0   : > { %2182 = vrcp.f32 %v1860_v7 }
 0x1a7   : > { %v2173_v8 = vpop.eup %2172 }
 0x1a8   : > { %v2175_v9 = vpop.eup %2174  ;;  %v1874_v10 = vmul.f32 %v2173_v8, %v1832_v38 }
 0x1a9   : > { %v2177_v11 = vpop.eup %2176  ;;  %v1879_v12 = vmul.f32 %v2175_v9, %v1837_v41 }
 0x1aa   : > { %v2179_v13 = vpop.eup %2178  ;;  %1880 = vst [vmem:[%s195_s9] sm:$0xff] %v1874_v10  ;;  %v1875_v14 = vmul.f32 %v2177_v11, %v1833_v47 }
 0x1ab   : > { %v2181_v15 = vpop.eup %2180  ;;  %1885 = vst [vmem:[%s195_s9 + $0x28] sm:$0xff] %v1879_v12  ;;  %v1876_v16 = vmul.f32 %v2179_v13, %v1834_v48 }
 0x1ac   : > { %1881 = vst [vmem:[%s195_s9 + $0x8] sm:$0xff] %v1875_v14  ;;  %v1877_v17 = vmul.f32 %v2181_v15, %v1835_v54  ;;  %1892 = sbr.rel (!%p2262_p4) target bundleno = 441 (0x1b9), region = 36 }
 0x1ad   : > { %v2183_v19 = vpop.eup %2182  ;;  %1882 = vst [vmem:[%s195_s9 + $0x10] sm:$0xff] %v1876_v16 }
 0x1ae   : > { %1883 = vst [vmem:[%s195_s9 + $0x18] sm:$0xff] %v1877_v17  ;;  %v1878_v21 = vmul.f32 %v2183_v19, %v1836_v57 }
 0x1b0   : > { %1884 = vst [vmem:[%s195_s9 + $0x20] sm:$0xff] %v1878_v21 }
 0x1b1   : > { %v1908_v18 = vld [vmem:[%s195_s9] sm:$0xff] }
 0x1b2   : > { %v1918_v26 = vld [vmem:[%s195_s9 + $0x28] sm:$0xff]  ;;  %1909 = vst [vmem:[%s1895_s14] sm:$0xff] %v1908_v18 }
 0x1b3   : > { %v1910_v22 = vld [vmem:[%s195_s9 + $0x8] sm:$0xff]  ;;  %1919 = vst [vmem:[%s1895_s14 + $0x40] sm:$0xff] %v1918_v26 }
 0x1b4   : > { %v1912_v23 = vld [vmem:[%s195_s9 + $0x10] sm:$0xff]  ;;  %1911 = vst [vmem:[%s1895_s14 + $0x8] sm:$0xff] %v1910_v22 }
 0x1b5   : > { %v1914_v24 = vld [vmem:[%s195_s9 + $0x18] sm:$0xff]  ;;  %1913 = vst [vmem:[%s1895_s14 + $0x10] sm:$0xff] %v1912_v23 }
 0x1b6   : > { %1915 = vst [vmem:[%s1895_s14 + $0x30] sm:$0xff] %v1914_v24 }
 0x1b7   : > { %v1916_v25 = vld [vmem:[%s195_s9 + $0x20] sm:$0xff] }
 0x1b8   : > { %1917 = vst [vmem:[%s1895_s14 + $0x38] sm:$0xff] %v1916_v25 }
 0x1b9 PF: > { %p10_p9 = scmp.ge.s32.totalorder %s2252_s16, 4   ;;  %s2448_s12 = smov %s2202_s13 }
 0x1ba   : > { %s2449_s13 = smov %s2260_s19  ;;  %s2450_s14 = smov %s2252_s16 }
 0x1bb   :  { %12 = sbr.rel (!%p10_p9) target bundleno = 2 (0x2), region = 96 }

</bundles_post_ra>
